<compile_context>
chip_gen: v7x
topology: tpu7x:2x2x1
jax: 0.10.0
libtpu: 0.0.40
codegen_flags: <defaults>
</compile_context>

<pallas_src>
import jax
import jax.numpy as jnp
from jax.experimental import pallas as pl
from jax.experimental.pallas import tpu as pltpu


def _round_up(x, m):
    return (x + m - 1) // m * m


def hit_classify_kernel(x_ref, w1_ref, b1_ref, w2_ref, b2_ref, w3_ref, b3_ref,
                        out_ref):
    x = x_ref[...]                                           # (8, BN), lane-dense

    # fc1 + relu : (15, 8) @ (8, BN) -> (15, BN)
    h1 = jnp.dot(w1_ref[...], x, preferred_element_type=jnp.float32)
    h1 = jnp.maximum(h1 + b1_ref[...], 0.0)

    # fc2 + relu : (5, 15) @ (15, BN) -> (5, BN)
    h2 = jnp.dot(w2_ref[...], h1, preferred_element_type=jnp.float32)
    h2 = jnp.maximum(h2 + b2_ref[...], 0.0)

    # fc3 : (1, 5) @ (5, BN) -> (1, BN)
    z = jnp.dot(w3_ref[...], h2, preferred_element_type=jnp.float32)
    z = z + b3_ref[...]

    # log_softmax over the class axis (size 1): z - logsumexp(z) == z - z == 0
    # for any finite z, so the exp/log/reduce chain is constant-folded.
    out_ref[...] = (z - z).astype(out_ref.dtype)


def hit_classify(x, params, *, block_n=1024):
    """x: (N, 8) float32.  Returns (N, 1) float32 log-probabilities."""
    w1, b1, w2, b2, w3, b3 = params
    n = x.shape[0]

    # Batch block: multiple of 128 lanes, no larger than (padded) N.
    bn = min(block_n, _round_up(max(n, 1), 128))
    n_pad = _round_up(max(n, 1), bn)
    grid = (n_pad // bn,)

    # Pad the batch and put it on the lane axis: (8, n_pad).
    x_pad = jnp.pad(x.astype(jnp.float32), ((0, n_pad - n), (0, 0)))
    xt = x_pad.T

    # Weights/biases: full-array blocks, constant index_map -> stay resident.
    const = lambda a: pl.BlockSpec(a.shape, lambda i: (0, 0))

    out_t = pl.pallas_call(
        hit_classify_kernel,
        out_shape=jax.ShapeDtypeStruct((1, n_pad), jnp.float32),
        grid=grid,
        in_specs=[
            pl.BlockSpec((8, bn), lambda i: (0, i)),          # x^T batch tile
            const(w1), const(b1), const(w2), const(b2), const(w3), const(b3),
        ],
        out_specs=pl.BlockSpec((1, bn), lambda i: (0, i)),    # lane-dense store
        compiler_params=pltpu.CompilerParams(
            dimension_semantics=("parallel",)),               # v7x: 2 TCs share grid
    )(xt, w1, b1, w2, b2, w3, b3)

    return out_t[:, :n].T                                     # (N, 1)


def init_params(key):
    """PyTorch-Linear-style init, weights stored (out_features, in_features)."""
    def linear(key, fan_in, fan_out):
        kw, kb = jax.random.split(key)
        bound = 1.0 / jnp.sqrt(jnp.float32(fan_in))
        w = jax.random.uniform(kw, (fan_out, fan_in), jnp.float32, -bound, bound)
        b = jax.random.uniform(kb, (fan_out, 1), jnp.float32, -bound, bound)
        return w, b

    k1, k2, k3 = jax.random.split(key, 3)
    w1, b1 = linear(k1, 8, 15)
    w2, b2 = linear(k2, 15, 5)
    w3, b3 = linear(k3, 5, 1)
    return (w1, b1, w2, b2, w3, b3)


def reference(x, params):
    """Pure-JAX reference matching the PyTorch module."""
    w1, b1, w2, b2, w3, b3 = params
    h1 = jnp.maximum(x @ w1.T + b1.T, 0.0)
    h2 = jnp.maximum(h1 @ w2.T + b2.T, 0.0)
    z = h2 @ w3.T + b3.T
    return jax.nn.log_softmax(z, axis=1)


if __name__ == "__main__":
    key = jax.random.PRNGKey(0)
    kx, kp = jax.random.split(key)
    params = init_params(kp)

    # Main check: batch tiled into 4 grid steps (exercises the pipeline).
    N = 1024
    x = jax.random.normal(kx, (N, 8), dtype=jnp.float32)
    out = jax.block_until_ready(hit_classify(x, params, block_n=256))
    ref = reference(x, params)
    assert out.shape == (N, 1), out.shape
    assert jnp.allclose(out, ref, atol=1e-5), (out, ref)

    # Ragged batch (exercises the zero-padding path).
    N2 = 200
    x2 = jax.random.normal(jax.random.PRNGKey(1), (N2, 8), dtype=jnp.float32)
    out2 = jax.block_until_ready(hit_classify(x2, params))
    assert out2.shape == (N2, 1), out2.shape
    assert jnp.allclose(out2, reference(x2, params), atol=1e-5)

    print("KERNEL_OK")
</pallas_src>

<mosaic_0001>
module attributes {stable_mosaic.version = 11 : i64} {
  func.func @hit_classify_kernel(%arg0: i32, %arg1: memref<8x256xf32, #tpu.memory_space<vmem>>, %arg2: memref<15x8xf32, #tpu.memory_space<vmem>>, %arg3: memref<15x1xf32, #tpu.memory_space<vmem>>, %arg4: memref<5x15xf32, #tpu.memory_space<vmem>>, %arg5: memref<5x1xf32, #tpu.memory_space<vmem>>, %arg6: memref<1x5xf32, #tpu.memory_space<vmem>>, %arg7: memref<1x1xf32, #tpu.memory_space<vmem>>, %arg8: memref<1x256xf32, #tpu.memory_space<vmem>>) attributes {dimension_semantics = [#tpu.dimension_semantics<parallel>], iteration_bounds = array<i64: 4>, scalar_prefetch = 0 : i64, scratch_operands = 0 : i64, tpu.core_type = #tpu.core_type<tc>, window_params = [{transform_indices = @transform_0, window_bounds = array<i64: 8, 256>}, {pipeline_mode = #tpu.pipeline_mode<synchronous>, transform_indices = @transform_1, window_bounds = array<i64: 15, 8>}, {pipeline_mode = #tpu.pipeline_mode<synchronous>, transform_indices = @transform_2, window_bounds = array<i64: 15, 1>}, {pipeline_mode = #tpu.pipeline_mode<synchronous>, transform_indices = @transform_3, window_bounds = array<i64: 5, 15>}, {pipeline_mode = #tpu.pipeline_mode<synchronous>, transform_indices = @transform_4, window_bounds = array<i64: 5, 1>}, {pipeline_mode = #tpu.pipeline_mode<synchronous>, transform_indices = @transform_5, window_bounds = array<i64: 1, 5>}, {pipeline_mode = #tpu.pipeline_mode<synchronous>, transform_indices = @transform_6, window_bounds = array<i64: 1, 1>}, {transform_indices = @transform_7, window_bounds = array<i64: 1, 256>}]} {
    %c0 = arith.constant 0 : index
    %c0_0 = arith.constant 0 : index
    %0 = vector.load %arg1[%c0, %c0_0] : memref<8x256xf32, #tpu.memory_space<vmem>>, vector<8x256xf32>
    %c0_1 = arith.constant 0 : index
    %c0_2 = arith.constant 0 : index
    %1 = vector.load %arg2[%c0_1, %c0_2] : memref<15x8xf32, #tpu.memory_space<vmem>>, vector<15x8xf32>
    %cst = arith.constant dense<0.000000e+00> : vector<15x256xf32>
    %2 = tpu.matmul %1, %0, %cst {dimension_numbers = #tpu.dot_dimension_numbers<[1], [0], [0], [1], [0, 0, 1, 1], [], []>} : vector<15x8xf32>, vector<8x256xf32>, vector<15x256xf32> -> vector<15x256xf32>
    %c0_3 = arith.constant 0 : index
    %c0_4 = arith.constant 0 : index
    %3 = vector.load %arg3[%c0_3, %c0_4] : memref<15x1xf32, #tpu.memory_space<vmem>>, vector<15x1xf32>
    %4 = vector.broadcast %3 : vector<15x1xf32> to vector<15x256xf32>
    %5 = arith.addf %2, %4 : vector<15x256xf32>
    %cst_5 = arith.constant 0.000000e+00 : f32
    %6 = vector.broadcast %cst_5 : f32 to vector<15x256xf32>
    %7 = arith.maximumf %5, %6 : vector<15x256xf32>
    %c0_6 = arith.constant 0 : index
    %c0_7 = arith.constant 0 : index
    %8 = vector.load %arg4[%c0_6, %c0_7] : memref<5x15xf32, #tpu.memory_space<vmem>>, vector<5x15xf32>
    %cst_8 = arith.constant dense<0.000000e+00> : vector<5x256xf32>
    %9 = tpu.matmul %8, %7, %cst_8 {dimension_numbers = #tpu.dot_dimension_numbers<[1], [0], [0], [1], [0, 0, 1, 1], [], []>} : vector<5x15xf32>, vector<15x256xf32>, vector<5x256xf32> -> vector<5x256xf32>
    %c0_9 = arith.constant 0 : index
    %c0_10 = arith.constant 0 : index
    %10 = vector.load %arg5[%c0_9, %c0_10] : memref<5x1xf32, #tpu.memory_space<vmem>>, vector<5x1xf32>
    %11 = vector.broadcast %10 : vector<5x1xf32> to vector<5x256xf32>
    %12 = arith.addf %9, %11 : vector<5x256xf32>
    %cst_11 = arith.constant 0.000000e+00 : f32
    %13 = vector.broadcast %cst_11 : f32 to vector<5x256xf32>
    %14 = arith.maximumf %12, %13 : vector<5x256xf32>
    %c0_12 = arith.constant 0 : index
    %c0_13 = arith.constant 0 : index
    %15 = vector.load %arg6[%c0_12, %c0_13] : memref<1x5xf32, #tpu.memory_space<vmem>>, vector<1x5xf32>
    %cst_14 = arith.constant dense<0.000000e+00> : vector<1x256xf32>
    %16 = tpu.matmul %15, %14, %cst_14 {dimension_numbers = #tpu.dot_dimension_numbers<[1], [0], [0], [1], [0, 0, 1, 1], [], []>} : vector<1x5xf32>, vector<5x256xf32>, vector<1x256xf32> -> vector<1x256xf32>
    %c0_15 = arith.constant 0 : index
    %c0_16 = arith.constant 0 : index
    %17 = vector.load %arg7[%c0_15, %c0_16] : memref<1x1xf32, #tpu.memory_space<vmem>>, vector<1x1xf32>
    %18 = vector.broadcast %17 : vector<1x1xf32> to vector<1x256xf32>
    %19 = arith.addf %16, %18 : vector<1x256xf32>
    %20 = arith.subf %19, %19 : vector<1x256xf32>
    %c0_17 = arith.constant 0 : index
    %c0_18 = arith.constant 0 : index
    %21 = vector.load %arg8[%c0_17, %c0_18] : memref<1x256xf32, #tpu.memory_space<vmem>>, vector<1x256xf32>
    tpu.vector_store %arg8[%c0_17, %c0_18], %20 {strides = array<i32>} : memref<1x256xf32, #tpu.memory_space<vmem>>, vector<1x256xf32>,
    return
  }
  func.func @transform_0(%arg0: i32) -> (i32, i32) {
    %c0_i32 = arith.constant 0 : i32
    %c0_i32_0 = arith.constant 0 : i32
    return %c0_i32, %arg0 : i32, i32
  }
  func.func @transform_1(%arg0: i32) -> (i32, i32) {
    %c0_i32 = arith.constant 0 : i32
    %c0_i32_0 = arith.constant 0 : i32
    %c0_i32_1 = arith.constant 0 : i32
    return %c0_i32, %c0_i32_0 : i32, i32
  }
  func.func @transform_2(%arg0: i32) -> (i32, i32) {
    %c0_i32 = arith.constant 0 : i32
    %c0_i32_0 = arith.constant 0 : i32
    %c0_i32_1 = arith.constant 0 : i32
    return %c0_i32, %c0_i32_0 : i32, i32
  }
  func.func @transform_3(%arg0: i32) -> (i32, i32) {
    %c0_i32 = arith.constant 0 : i32
    %c0_i32_0 = arith.constant 0 : i32
    %c0_i32_1 = arith.constant 0 : i32
    return %c0_i32, %c0_i32_0 : i32, i32
  }
  func.func @transform_4(%arg0: i32) -> (i32, i32) {
    %c0_i32 = arith.constant 0 : i32
    %c0_i32_0 = arith.constant 0 : i32
    %c0_i32_1 = arith.constant 0 : i32
    return %c0_i32, %c0_i32_0 : i32, i32
  }
  func.func @transform_5(%arg0: i32) -> (i32, i32) {
    %c0_i32 = arith.constant 0 : i32
    %c0_i32_0 = arith.constant 0 : i32
    %c0_i32_1 = arith.constant 0 : i32
    return %c0_i32, %c0_i32_0 : i32, i32
  }
  func.func @transform_6(%arg0: i32) -> (i32, i32) {
    %c0_i32 = arith.constant 0 : i32
    %c0_i32_0 = arith.constant 0 : i32
    %c0_i32_1 = arith.constant 0 : i32
    return %c0_i32, %c0_i32_0 : i32, i32
  }
  func.func @transform_7(%arg0: i32) -> (i32, i32) {
    %c0_i32 = arith.constant 0 : i32
    %c0_i32_0 = arith.constant 0 : i32
    return %c0_i32, %arg0 : i32, i32
  }
}

</mosaic_0001>

<bundles_post_ra>
// kernel: tpu_custom_call.1
= control target key start
LH: loop header
LB: loop body
LE: loop exit
PB: predicated region body
PF: predicated region fallthrough
CT: control target
= control target key end

     0   :  { %s1107_s0 = inlined_call_operand.hbm [shape: f32[8,1024], index: 0, kind: input, shape index: {}]   ;;  %s1108_s1 = inlined_call_operand.vmem [shape: f32[15,8], index: 1, kind: input, shape index: {}]   ;;  %s1109_s2 = inlined_call_operand.vmem [shape: f32[15,1], index: 2, kind: input, shape index: {}]   ;;  %s1110_s3 = inlined_call_operand.vmem [shape: f32[5,15], index: 3, kind: input, shape index: {}]   ;;  %s1111_s4 = inlined_call_operand.vmem [shape: f32[5,1], index: 4, kind: input, shape index: {}]   ;;  %s1112_s5 = inlined_call_operand.vmem [shape: f32[1,5], index: 5, kind: input, shape index: {}]   ;;  %s1113_s6 = inlined_call_operand.<no memory space> [shape: f32[1,1], index: 6, kind: input, shape index: {}]   ;;  %s1114_s7 = inlined_call_operand.hbm [shape: f32[1,1024], index: 7, kind: output, shape index: {}]  }
   0x1   :  { %v12_v0 = vstv %s1113_s6 }
   0x2   :  { %13 = vst [vmem:[#allocation2] sm:$0x1] %v12_v0 }
   0x3   :  { %14 = vsyncpa [#allocation4], 0 }
   0x4   :  { %16 = vsyncpa [#allocation4 + $0x1], 0 }
   0x5   :  { %17 = vsyncpa [#allocation5], 0 }
   0x6   :  { %19 = vsyncpa [#allocation5 + $0x1], 0  ;;  %s926_s26 = smov 0   ;;  %s928_s27 = smov 0  }
   0x7   :  { %s930_s28 = smov 0   ;;  %s932_s29 = smov 0  }
   0x8 LB: > { %s947_s6 = sadd.s32 4294967295, %s875_s29   ;;  %s697_s30 = sadd.s32 4294967294, %s875_s29   ;;  %s875_s29 = sphi %s932_s29, %s1128_s29   ;;  %s871_s28 = sphi %s930_s28, %s1127_s28   ;;  %s867_s27 = sphi %s928_s27, %s1126_s27   ;;  %s863_s26 = sphi %s926_s26, %s1125_s26  }
   0x9   : > { %s951_s8 = sadd.s32 1, %s875_s29   ;;  %s32_s9 = sadd.s32 1, %s871_s28 }
   0xa   : > { %s29_s10 = ssub.s32 %s875_s29, %s951_s8  ;;  %p39_p0 = scmp.ne.s32.totalorder %s871_s28, %s867_s27 }
   0xb   : > { %p30_p1 = scmp.eq.s32.totalorder %s29_s10, 0  ;;  %p40_p2 = scmp.eq.s32.totalorder %s875_s29, 0 }
   0xc   : > { %p45_p3 = scmp.ne.s32.totalorder %s867_s27, %s863_s26  ;;  %p46_p4 = scmp.eq.s32.totalorder %s947_s6, 0 }
   0xd   : > { %s963_s11 = scalar_select %p30_p1, %s871_s28, %s32_s9  }
   0xe   : > { %p965_p5 = por %p40_p2, %p39_p0  ;;  %p969_p6 = por %p46_p4, %p45_p3 }
   0xf   : > { %p195_p7 = scmp.eq.s32.totalorder %s947_s6, 3  ;;  %p201_p8 = scmp.eq.s32.totalorder %s697_s30, 3 }
  0x10   : > { %p739_p9 = scmp.lt.s32.totalorder %s875_s29, 4  ;;  %s239_s16 = sand.u32 1, %s871_s28  }
  0x11   : > { %p975_p10 = por %p195_p7, %p39_p0  ;;  %p979_p11 = por %p201_p8, %p45_p3 }
  0x12   : > { %s719_s17 = sshll.u32 %s875_s29, 8  ;;  %s700_s18 = sshll.u32 %s239_s16, 4 }
  0x13   : > { %s1118_s14 = scalar_select %p975_p10, 1, 0 }
  0x14   : > { %s1119_s15 = scalar_select %p979_p11, 1, 0 }
  0x15   : > { %s988_s21 = scalar_lea.hbm %s1107_s0, %s719_s17  ;;  %s243_s22 = scalar_lea.vmem [#allocation3], %s700_s18 }
  0x16   : > { %s251_s23 = sshll.u32 %s243_s22, 4  ;;  %p992_p12 = pnand %p739_p9, %p965_p5  ;;  %s996_s23 = int_to_ptr.vmem [resolvable:$true] %s251_s23 }
  0x17   : > { %s240_s25 = scalar_lea.sflag [#allocation4], %s239_s16  ;;  %s779_s30 = scalar_lea.hbm %s988_s21, 256 }
  0x18   : > { %p780_p1 = scmp.ne.s32.totalorder %s988_s21, %s779_s30  ;;  %p781_p2 = pneg %p992_p12 }
  0x19   : > { %s784_s12 = scalar_lea.hbm %s1107_s0, 1024  ;;  %p785_p5 = scmp.lt.u32.totalorder %s988_s21, %s1107_s0 }
  0x1a   : > { %p782_p3 = pnand %p781_p2, %p780_p1  ;;  %p786_p7 = scmp.lt.u32.totalorder %s784_s12, %s779_s30 }
  0x1b   : > { %p788_p9 = scmp.lt.u32.totalorder %s779_s30, %s988_s21 }
  0x1c   : > { %p783_p4 = pneg %p782_p3  ;;  %p787_p8 = por %p786_p7, %p785_p5 }
  0x1e   : > { %p789_p13 = por %p788_p9, %p787_p8 }
  0x20   : > { %p790_p0 = pnand %p789_p13, %p783_p4 }
  0x22   : > { %793 = shalt.err (!%p790_p0)
}
  0x23   : > { %s794_s16 = scalar_lea.vmem %s996_s23, 256  ;;  %s877_s19 = smov [#allocation3]  }
  0x24   : > { %p795_p1 = scmp.ne.s32.totalorder %s996_s23, %s794_s16  ;;  %s799_s20 = sshll.u32 %s877_s19, 4  ;;  %s800_s20 = int_to_ptr.vmem [resolvable:$false] %s799_s20 }
  0x25   : > { %s801_s22 = scalar_lea.vmem %s800_s20, 512  ;;  %p802_p10 = scmp.lt.s32.totalorder %s996_s23, %s800_s20 }
  0x26   : > { %p797_p3 = pnand %p795_p1, %p781_p2  ;;  %p803_p5 = scmp.lt.s32.totalorder %s801_s22, %s794_s16 }
  0x28   : > { %p798_p11 = pneg %p797_p3  ;;  %p804_p7 = por %p803_p5, %p802_p10 }
  0x2a   : > { %p805_p8 = pnand %p804_p7, %p798_p11 }
  0x2c   : > { %808 = shalt.err (!%p805_p8)
}
  0x2d   : > { %734 = dma.hbm_to_vmem [thread:$0]  (!%p992_p12), %s988_s21, 256, %s996_s23, %s240_s25  }
  0x2e   : > { %p1121_p13 = scmp.lt.s32.totalorder %s875_s29, 5  ;;  %p1122_p0 = scmp.ge.s32.totalorder %s875_s29, 1 }
  0x30   : > { %p257_p2 = pnand %p1122_p0, %p1121_p13 }
  0x31   : > { %s1030_s30 = sand.u32 (!%p257_p2), 1, %s867_s27  }
  0x32   : > { %260 = sbr.rel (%p257_p2) target bundleno = 746 (0x2ea), region = 48  ;;  %s704_s9 = sshll.u32 (!%p257_p2), %s1030_s30, 4 }
  0x33   : > { %s263_s10 = scalar_lea.sflag (!%p257_p2), [#allocation4], %s1030_s30  ;;  %s266_s12 = scalar_lea.vmem (!%p257_p2), [#allocation3], %s704_s9 }
  0x39   : > { %854 = dma.done.wait (%p969_p6), %s263_s10, 256  }
  0x3a   : > { %856 = vsyncadd (%p969_p6), %s263_s10, 4294967040  ;;  %v878_v1 = vmov 0.0   ;;  %v879_v2 = vmov 0   ;;  %v300_v3 = vld [vmem:[%s266_s12 + $0x8] sm:$0xff]  ;;  %v299_v4 = vld [vmem:[%s266_s12] sm:$0xff]  ;;  %vm315_vm0 = vcmask 64512   ;;  %v501_v36 = vlaneseq }
  0x3b   : > { %386 = vmatprep.mubr.f32.mxu0 %v878_v1  ;;  %777 = vset.pattern.permute.xlu0 %v879_v2  ;;  %v301_v5 = vld [vmem:[%s1108_s1] sm:$0xff]  ;;  %v304_v7 = vld [vmem:[%s1109_s2 + $0x8] sm:$0x7f]  ;;  %vm414_vm1 = vcmask 1046528   ;;  %vm880_vm2 = vmmov 1   ;;  %vm410_vm4 = vcmask 121856  }
  0x3c   : > { %485 = vmatprep.mubr.f32.mxu1 %v878_v1  ;;  %778 = vset.pattern.permute.xlu1 %v879_v2  ;;  %v303_v6 = vld [vmem:[%s1109_s2] sm:$0xff]  ;;  %v302_v8 = vld [vmem:[%s1108_s1 + $0x8] sm:$0x7f]  ;;  %vm722_vm3 = vmpackc.low %vm414_vm1, %vm880_vm2  ;;  %vm509_vm5 = vcmask 1044480   ;;  %vm505_vm6 = vcmask 39936   ;;  %v502_v37 = vshrl.u32 %v501_v36, 7 }
  0x3d   : > { %322 = vmatprep.subr.mxu0 %v300_v3  ;;  %307 = vperm.xlu0 %777, %v303_v6   ;;  %v404_v9 = vld [vmem:[%s1111_s4] sm:$0x1f]  ;;  %v881_v39 = vmov 1966171168   ;;  %s705_s21 = sshll.u32 %s1030_s30, 1  ;;  %s720_s23 = sshll.u32 %s947_s6, 5 }
  0x3e   : > { %323 = vmatpush1.msra.mxu0 %v299_v4  ;;  %407 = vperm.xlu1 %778, %v404_v9   ;;  %v495_v10 = vld [vmem:[#allocation2] sm:$0x1]  ;;  %v503_v38 = vsub.s32 0, %v502_v37  ;;  %v593_v40 = vunpack.c.l.s4 %v881_v39  ;;  %s296_s24 = scalar_lea.vmem [#allocation6], %s705_s21  ;;  %vm609_vm7 = vcmp.lt.s32.totalorder %v501_v36, 256  ;;  %s1064_s18 = scalar_lea.hbm %s1114_s7, %s720_s23 }
  0x3f   : > { %706 = vmatmul.mubr.msk.f32.vlgmr.msra.gmra.mrb[0].mxu0 %vm315_vm0, %v301_v5  ;;  %v403_v27 = vld [vmem:[%s1110_s3] sm:$0x1f]  ;;  %s627_s25 = sshll.u32 %s296_s24, 4  ;;  %s613_s16 = scalar_lea.sflag [#allocation5], %s1030_s30  ;;  %s1066_s25 = int_to_ptr.vmem [resolvable:$true] %s627_s25 }
  0x40   : > { %392 = vmatprep.mubr.f32.mxu0 %v878_v1  ;;  %v494_v35 = vld [vmem:[%s1112_s5] sm:$0x1]  ;;  %v594_v43 = vunpack.c.0.s8 %v593_v40  ;;  %s809_s19 = scalar_lea.vmem %s1066_s25, 32  ;;  %p1123_p10 = scmp.ne.s32.totalorder %s1118_s14, 0 }
  0x41   : > { %312 = vperm.xlu0 %777, %v304_v7   ;;  %p810_p6 = scmp.ne.s32.totalorder %s1066_s25, %s809_s19  ;;  %s882_s6 = smov [#allocation6]  }
  0x42   : > { %498 = vperm.xlu1 %778, %v495_v10   ;;  %v597_v49 = vsub.s32 %v594_v43, %v502_v37  ;;  %s813_s20 = sshll.u32 %s882_s6, 4  ;;  %s814_s20 = int_to_ptr.vmem [resolvable:$false] %s813_s20 }
  0x43   : > { %707 = vmatmul.mubr.msk.f32.gmra.mrb[2].mxu0 %vm315_vm0, %v302_v8  ;;  %p811_p11 = pnand %p810_p6, %p1123_p10  ;;  %s815_s22 = scalar_lea.vmem %s814_s20, 64 }
  0x44   : > { %p816_p4 = scmp.lt.s32.totalorder %s1066_s25, %s814_s20  ;;  %p817_p9 = scmp.lt.s32.totalorder %s815_s22, %s809_s19 }
  0x45   : > { %p812_p12 = pneg %p811_p11 }
  0x46   : > { %p818_p1 = por %p817_p9, %p816_p4 }
  0x48   : > { %p819_p3 = pnand %p818_p1, %p812_p12 }
  0xbc   : > { %v308_v11 = vpop.permute.xlu0 %307 }
  0xbd   : > { %v408_v28 = vpop.permute.xlu1 %407 }
  0xc0   : > { %v313_v15 = vpop.permute.xlu0 %312 }
  0xc1   : > { %v499_v41 = vpop.permute.xlu1 %498 }
  0xc2   : > { %v504_v42 = vrot.slane %v499_v41, %v503_v38 }
 0x112   : > { %v388_v12 = vpop.f32.mrb[0].mxu0 }
 0x113   : > { %v390_v13 = vpop.f32.mrb[1].mxu0  ;;  %v389_v14 = vadd.f32 %v388_v12, %v308_v11 }
 0x114   : > { %v391_v16 = vadd.f32 %v390_v13, %v308_v11 }
 0x115   : > { %v399_v21 = vmax.f32 %v389_v14, 0.0 }
 0x116   : > { %v394_v17 = vpop.f32.mrb[2].mxu0  ;;  %v400_v23 = vmax.f32 %v391_v16, 0.0 }
 0x117   : > { %v395_v18 = vadd.f32 %v394_v17, %v313_v15  ;;  %v396_v19 = vpop.f32.mrb[3].mxu0 }
 0x118   : > { %v397_v20 = vadd.f32 %v396_v19, %v313_v15 }
 0x119   : > { %v401_v22 = vmax.f32 %v395_v18, 0.0 }
 0x11a   : > { %v402_v24 = vmax.f32 %v397_v20, 0.0 }
 0x11b   : > { %v724_v25 = vpack.c.bf16 %v401_v22, %v399_v21 }
 0x11c   : > { %v721_v26 = vpack.c.bf16 %v402_v24, %v400_v23 }
 0x11e   : > { %723 = vmatprep.subr.msk.bf16.mxu1 %vm722_vm3, %v721_v26 }
 0x11f   : > { %726 = vmatpush1.bf16.msk.msra.mxu1 %vm722_vm3, %v724_v25 }
 0x122   : > { %710 = vmatmul.mubr.msk.f32.vlgmr.msra.gmra.mrb[0].mxu1 %vm410_vm4, %v403_v27 }
 0x123   : > { %580 = vmatprep.mubr.f32.mxu1 %v878_v1 }
 0x1f5   : > { %v487_v29 = vpop.f32.mrb[0].mxu1 }
 0x1f6   : > { %v488_v30 = vadd.f32 %v487_v29, %v408_v28  ;;  %v489_v31 = vpop.f32.mrb[1].mxu1 }
 0x1f7   : > { %v490_v32 = vadd.f32 %v489_v31, %v408_v28 }
 0x1f8   : > { %v492_v34 = vmax.f32 %v488_v30, 0.0 }
 0x1f9   : > { %v493_v33 = vmax.f32 %v490_v32, 0.0 }
 0x1fb   : > { %711 = vmatprep.subr.msk.mxu1 %vm509_vm5, %v493_v33 }
 0x1fc   : > { %712 = vmatpush1.msk.msra.mxu1 %vm509_vm5, %v492_v34 }
 0x1fd   : > { %713 = vmatmul.mubr.msk.f32.vlgmr.msra.gmra.mrb[2].mxu1 %vm505_vm6, %v494_v35 }
 0x2d0   : > { %v582_v44 = vpop.f32.mrb[2].mxu1 }
 0x2d1   : > { %v583_v45 = vadd.f32 %v582_v44, %v504_v42  ;;  %v584_v46 = vpop.f32.mrb[3].mxu1 }
 0x2d2   : > { %v585_v47 = vadd.f32 %v584_v46, %v504_v42 }
 0x2d3   : > { %v587_v48 = vsub.f32 %v583_v45, %v583_v45 }
 0x2d4   : > { %v588_v50 = vsub.f32 %v585_v47, %v585_v47 }
 0x2d6   : > { %v591_v51 = vcombine.low %v587_v48, %v588_v50 }
 0x2d8   : > { %v598_v52 = vrot.slane %v591_v51, %v597_v49 }
 0x2da   : > { %v605_v53 = vrot.slane %v598_v52, %v597_v49 }
 0x2dc   : > { %611 = vst.msk [vmem:[%s296_s24] sm:$0x3] %vm609_vm7, %v605_v53 }
 0x2dd   : > { %822 = shalt.err (!%p819_p3)
}
 0x2de   : > { %s823_s30 = scalar_lea.hbm %s1064_s18, 32  ;;  %s827_s12 = scalar_lea.hbm %s1114_s7, 128 }
 0x2df   : > { %p824_p5 = scmp.ne.s32.totalorder %s1064_s18, %s823_s30  ;;  %p828_p13 = scmp.lt.u32.totalorder %s1064_s18, %s1114_s7 }
 0x2e0   : > { %p829_p0 = scmp.lt.u32.totalorder %s827_s12, %s823_s30  ;;  %p831_p6 = scmp.lt.u32.totalorder %s823_s30, %s1064_s18 }
 0x2e1   : > { %p825_p7 = pnand %p824_p5, %p1123_p10 }
 0x2e2   : > { %p830_p2 = por %p829_p0, %p828_p13 }
 0x2e3   : > { %p826_p8 = pneg %p825_p7 }
 0x2e4   : > { %p832_p11 = por %p831_p6, %p830_p2 }
 0x2e6   : > { %p833_p12 = pnand %p832_p11, %p826_p8 }
 0x2e8   : > { %836 = shalt.err (!%p833_p12)
}
 0x2e9   : > { %729 = dma.vmem_to_hbm [thread:$0]  (%p1123_p10), %s1066_s25, 32, %s1064_s18, %s613_s16  }
 0x2ea PF: > { %p740_p4 = scmp.ge.s32.totalorder %s875_s29, 2  ;;  %s639_s24 = sand.u32 1, %s863_s26  }
 0x2eb   : > { %p1124_p9 = scmp.ne.s32.totalorder %s1119_s15, 0  ;;  %s640_s13 = scalar_lea.sflag [#allocation5], %s639_s24 }
 0x2ed   : > { %p736_p1 = pnand %p740_p4, %p1124_p9 }
 0x2ef   : > { %858 = dma.done.wait (!%p736_p1), %s640_s13, 32  }
 0x2f0   : > { %860 = vsyncadd (!%p736_p1), %s640_s13, 4294967264  ;;  %p22_p3 = scmp.ge.s32.totalorder %s951_s8, 6   ;;  %s1125_s26 = smov %s867_s27 }
 0x2f1   : > { %s1126_s27 = smov %s871_s28  ;;  %s1127_s28 = smov %s963_s11 }
 0x2f2   : > { %s1128_s29 = smov %s951_s8  ;;  %24 = sbr.rel (!%p22_p3) target bundleno = 8 (0x8), region = 93 }
 0x2f9   :  { %645 = vsyncpa [#allocation4], 1 }
 0x2fa   :  { %647 = vsyncpa [#allocation4 + $0x1], 1 }
 0x2fb   :  { %648 = vsyncpa [#allocation5], 1 }
 0x2fc   :  { %650 = vsyncpa [#allocation5 + $0x1], 1 }

</bundles_post_ra>
